<compile_context>
chip_gen: v7x
topology: tpu7x:2x2x1
jax: 0.10.0
libtpu: 0.0.40
codegen_flags: <defaults>
</compile_context>

<pallas_src>
import functools

import numpy as np
import jax
import jax.numpy as jnp
from jax.experimental import pallas as pl
from jax.experimental.pallas import tpu as pltpu

LN_EPS = 1e-12
LANE = 128
SUBLANE = 8


def _round_up(x, m):
    return ((x + m - 1) // m) * m


def _init_posi_embedding(max_position_embedding: int, hidden_size: int) -> np.ndarray:
    """Exact reproduction of the PyTorch module's sinusoidal table."""
    lookup_table = np.zeros((max_position_embedding, hidden_size), dtype=np.float32)
    for pos in range(max_position_embedding):
        for idx in np.arange(0, hidden_size, step=2):
            lookup_table[pos, idx] = np.sin(pos / 10000 ** (2 * idx / hidden_size))
    for pos in range(max_position_embedding):
        for idx in np.arange(1, hidden_size, step=2):
            lookup_table[pos, idx] = np.cos(pos / 10000 ** (2 * idx / hidden_size))
    return lookup_table


def _embedding_kernel(ids_ref, tbl_ref, gamma_ref, beta_ref, out_ref, *, inv_h):
    TR, Hp = out_ref.shape
    V = tbl_ref.shape[0]

    # Multi-hot over the fused (disjoint-offset) vocabulary: boolean ORs + ONE cast.
    iota = jax.lax.broadcasted_iota(jnp.int32, (TR, V), 1)
    hit = ids_ref[:, 0:1] == iota
    hit = hit | (ids_ref[:, 1:2] == iota)
    hit = hit | (ids_ref[:, 2:3] == iota)
    hit = hit | (ids_ref[:, 3:4] == iota)
    multi_hot = hit.astype(jnp.float32)

    # Single MXU push: (TR, V_pad) @ (V_pad, Hp) == word + seg + age + posi sum.
    x = jnp.dot(multi_hot, tbl_ref[...], preferred_element_type=jnp.float32)

    # Single-pass LayerNorm over the REAL hidden size (zero-padded columns of the
    # table contribute nothing to either sum).
    s1 = jnp.sum(x, axis=-1, keepdims=True)
    s2 = jnp.sum(x * x, axis=-1, keepdims=True)
    mean = s1 * inv_h
    var = jnp.maximum(s2 * inv_h - mean * mean, 0.0)
    y = (x - mean) * jax.lax.rsqrt(var + LN_EPS) * gamma_ref[...] + beta_ref[...]

    out_ref[...] = y.astype(out_ref.dtype)


def build_fused_embedding(word_tbl, seg_tbl, age_tbl, posi_tbl, gamma, beta):
    """Precompute (once, at module-init time) the fused, lane-padded tables."""
    H = word_tbl.shape[1]
    Hp = _round_up(H, LANE)
    Vw, Vs, Va, Vp = (word_tbl.shape[0], seg_tbl.shape[0],
                      age_tbl.shape[0], posi_tbl.shape[0])
    V_total = Vw + Vs + Va + Vp
    V_pad = _round_up(V_total, LANE)

    tbl = jnp.concatenate([word_tbl, seg_tbl, age_tbl, posi_tbl], axis=0)
    tbl = jnp.pad(tbl, ((0, V_pad - V_total), (0, Hp - H)))
    gamma_p = jnp.pad(gamma.reshape(1, H), ((0, 0), (0, Hp - H)))
    beta_p = jnp.pad(beta.reshape(1, H), ((0, 0), (0, Hp - H)))

    return dict(table=tbl, gamma=gamma_p, beta=beta_p,
                offsets=(0, Vw, Vw + Vs, Vw + Vs + Va),
                hidden_size=H, hidden_pad=Hp, vocab_pad=V_pad)


def embedding_forward(word_ids, age_ids, seg_ids, posi_ids, fused):
    B, S = word_ids.shape
    R = B * S
    H = fused["hidden_size"]
    Hp = fused["hidden_pad"]
    V_pad = fused["vocab_pad"]
    off_w, off_s, off_a, off_p = fused["offsets"]

    # Row tiling: bounds the (TR, V_pad) multi-hot working set and pipelines the
    # id-tile / output-tile DMAs against compute.
    TR = 256 if R >= 256 else _round_up(R, SUBLANE)
    R_pad = _round_up(R, TR)

    # Pack the four id streams into one (R, 4) int32 array (single DMA / buffer).
    ids = jnp.stack(
        [word_ids.reshape(R).astype(jnp.int32) + off_w,
         seg_ids.reshape(R).astype(jnp.int32) + off_s,
         age_ids.reshape(R).astype(jnp.int32) + off_a,
         posi_ids.reshape(R).astype(jnp.int32) + off_p], axis=1)
    if R_pad != R:
        ids = jnp.pad(ids, ((0, R_pad - R), (0, 0)))  # padded rows hit row 0; sliced off

    grid = (R_pad // TR,)
    kernel = functools.partial(_embedding_kernel, inv_h=1.0 / H)

    # Scoped-VMEM budget: resident table + double-buffered tiles + temporaries.
    vmem_bytes = (2 * V_pad * Hp * 4 + 4 * Hp * 4
                  + 2 * (TR * LANE * 4 + TR * Hp * 4)
                  + TR * V_pad * 4 + 2 * TR * Hp * 4)
    vmem_limit = int(min(max(2 * vmem_bytes, 32 * 1024 * 1024), 128 * 1024 * 1024))

    cost = pl.CostEstimate(
        flops=2 * R_pad * V_pad * Hp + 10 * R_pad * Hp,
        transcendentals=0,
        bytes_accessed=V_pad * Hp * 4 + R_pad * 4 * 4 + R_pad * Hp * 4 + 2 * Hp * 4)

    out = pl.pallas_call(
        kernel,
        out_shape=jax.ShapeDtypeStruct((R_pad, Hp), jnp.float32),
        grid=grid,
        in_specs=[pl.BlockSpec((TR, 4), lambda i: (i, 0)),       # packed ids tile
                  pl.BlockSpec((V_pad, Hp), lambda i: (0, 0)),   # resident fused table
                  pl.BlockSpec((1, Hp), lambda i: (0, 0)),       # gamma
                  pl.BlockSpec((1, Hp), lambda i: (0, 0))],      # beta
        out_specs=pl.BlockSpec((TR, Hp), lambda i: (i, 0)),      # lane-dense output
        compiler_params=pltpu.CompilerParams(
            dimension_semantics=("parallel",),
            vmem_limit_bytes=vmem_limit),
        cost_estimate=cost,
    )(ids, fused["table"], fused["gamma"], fused["beta"])

    return out[:R, :H].reshape(B, S, H)


def reference_forward(word_ids, age_ids, seg_ids, posi_ids,
                      word_tbl, seg_tbl, age_tbl, posi_tbl, gamma, beta):
    x = (jnp.take(posi_tbl, posi_ids, axis=0)
         + jnp.take(age_tbl, age_ids, axis=0)
         + jnp.take(seg_tbl, seg_ids, axis=0)
         + jnp.take(word_tbl, word_ids, axis=0))
    mean = jnp.mean(x, axis=-1, keepdims=True)
    var = jnp.mean((x - mean) ** 2, axis=-1, keepdims=True)
    xn = (x - mean) / jnp.sqrt(var + LN_EPS)
    return xn * gamma[0] + beta[0]


if __name__ == "__main__":
    params = dict(vocab_size=64, seg_vocab_size=4, age_vocab_size=16,
                  max_seq_length=32, hidden_size=32, hidden_dropout_prob=0.1)

    B, S, H = 2, 8, params["hidden_size"]

    key = jax.random.PRNGKey(0)
    k_w, k_s, k_a, k_wid, k_aid, k_sid = jax.random.split(key, 6)

    # Deterministic parameter init (nn.Embedding ~ N(0,1); LayerNorm gamma=1, beta=0).
    word_tbl = jax.random.normal(k_w, (params["vocab_size"], H), dtype=jnp.float32)
    seg_tbl = jax.random.normal(k_s, (params["seg_vocab_size"], H), dtype=jnp.float32)
    age_tbl = jax.random.normal(k_a, (params["age_vocab_size"], H), dtype=jnp.float32)
    posi_tbl = jnp.asarray(_init_posi_embedding(params["max_seq_length"], H))
    gamma = jnp.ones((1, H), dtype=jnp.float32)
    beta = jnp.zeros((1, H), dtype=jnp.float32)

    word_ids = jax.random.randint(k_wid, (B, S), 0, params["vocab_size"], dtype=jnp.int32)
    age_ids = jax.random.randint(k_aid, (B, S), 0, params["age_vocab_size"], dtype=jnp.int32)
    seg_ids = jax.random.randint(k_sid, (B, S), 0, params["seg_vocab_size"], dtype=jnp.int32)
    posi_ids = jnp.tile(jnp.arange(S, dtype=jnp.int32)[None, :], (B, 1))

    # Fused / padded tables are built once, outside the per-call path.
    fused = build_fused_embedding(word_tbl, seg_tbl, age_tbl, posi_tbl, gamma, beta)

    out = embedding_forward(word_ids, age_ids, seg_ids, posi_ids, fused)
    out = jax.block_until_ready(out)

    ref = reference_forward(word_ids, age_ids, seg_ids, posi_ids,
                            word_tbl, seg_tbl, age_tbl, posi_tbl, gamma, beta)
    np.testing.assert_allclose(np.asarray(out), np.asarray(ref), rtol=1e-5, atol=1e-5)

    print("KERNEL_OK")
</pallas_src>

<mosaic_0001>
module attributes {stable_mosaic.version = 11 : i64} {
  func.func @_embedding_kernel(%arg0: i32, %arg1: memref<16x4xi32, #tpu.memory_space<vmem>>, %arg2: memref<128x128xf32, #tpu.memory_space<vmem>>, %arg3: memref<1x128xf32, #tpu.memory_space<vmem>>, %arg4: memref<1x128xf32, #tpu.memory_space<vmem>>, %arg5: memref<16x128xf32, #tpu.memory_space<vmem>>) attributes {dimension_semantics = [#tpu.dimension_semantics<parallel>], iteration_bounds = array<i64: 1>, scalar_prefetch = 0 : i64, scratch_operands = 0 : i64, tpu.core_type = #tpu.core_type<tc>, window_params = [{transform_indices = @transform_0, window_bounds = array<i64: 16, 4>}, {pipeline_mode = #tpu.pipeline_mode<synchronous>, transform_indices = @transform_1, window_bounds = array<i64: 128, 128>}, {pipeline_mode = #tpu.pipeline_mode<synchronous>, transform_indices = @transform_2, window_bounds = array<i64: 1, 128>}, {pipeline_mode = #tpu.pipeline_mode<synchronous>, transform_indices = @transform_3, window_bounds = array<i64: 1, 128>}, {transform_indices = @transform_4, window_bounds = array<i64: 16, 128>}]} {
    %0 = tpu.iota {dimensions = array<i32: 1>} : vector<16x128xi32>
    %c0 = arith.constant 0 : index
    %c0_0 = arith.constant 0 : index
    %1 = vector.load %arg1[%c0, %c0_0] : memref<16x4xi32, #tpu.memory_space<vmem>>, vector<16x1xi32>
    %2 = vector.broadcast %1 : vector<16x1xi32> to vector<16x128xi32>
    %3 = arith.cmpi eq, %2, %0 : vector<16x128xi32>
    %c0_1 = arith.constant 0 : index
    %c1 = arith.constant 1 : index
    %4 = vector.load %arg1[%c0_1, %c1] : memref<16x4xi32, #tpu.memory_space<vmem>>, vector<16x1xi32>
    %5 = vector.broadcast %4 : vector<16x1xi32> to vector<16x128xi32>
    %6 = arith.cmpi eq, %5, %0 : vector<16x128xi32>
    %7 = arith.ori %3, %6 : vector<16x128xi1>
    %c0_2 = arith.constant 0 : index
    %c2 = arith.constant 2 : index
    %8 = vector.load %arg1[%c0_2, %c2] : memref<16x4xi32, #tpu.memory_space<vmem>>, vector<16x1xi32>
    %9 = vector.broadcast %8 : vector<16x1xi32> to vector<16x128xi32>
    %10 = arith.cmpi eq, %9, %0 : vector<16x128xi32>
    %11 = arith.ori %7, %10 : vector<16x128xi1>
    %c0_3 = arith.constant 0 : index
    %c3 = arith.constant 3 : index
    %12 = vector.load %arg1[%c0_3, %c3] : memref<16x4xi32, #tpu.memory_space<vmem>>, vector<16x1xi32>
    %13 = vector.broadcast %12 : vector<16x1xi32> to vector<16x128xi32>
    %14 = arith.cmpi eq, %13, %0 : vector<16x128xi32>
    %15 = arith.ori %11, %14 : vector<16x128xi1>
    %16 = arith.extui %15 : vector<16x128xi1> to vector<16x128xi32>
    %17 = arith.sitofp %16 : vector<16x128xi32> to vector<16x128xf32>
    %c0_4 = arith.constant 0 : index
    %c0_5 = arith.constant 0 : index
    %18 = vector.load %arg2[%c0_4, %c0_5] : memref<128x128xf32, #tpu.memory_space<vmem>>, vector<128x128xf32>
    %cst = arith.constant dense<0.000000e+00> : vector<16x128xf32>
    %19 = tpu.matmul %17, %18, %cst {dimension_numbers = #tpu.dot_dimension_numbers<[1], [0], [0], [1], [0, 0, 1, 1], [], []>} : vector<16x128xf32>, vector<128x128xf32>, vector<16x128xf32> -> vector<16x128xf32>
    %cst_6 = arith.constant dense<0.000000e+00> : vector<16xf32>
    %20 = vector.multi_reduction <add>, %19, %cst_6 [1] : vector<16x128xf32> to vector<16xf32>
    %21 = vector.shape_cast %20 : vector<16xf32> to vector<16x1xf32>
    %22 = arith.mulf %19, %19 : vector<16x128xf32>
    %cst_7 = arith.constant dense<0.000000e+00> : vector<16xf32>
    %23 = vector.multi_reduction <add>, %22, %cst_7 [1] : vector<16x128xf32> to vector<16xf32>
    %24 = vector.shape_cast %23 : vector<16xf32> to vector<16x1xf32>
    %cst_8 = arith.constant 3.125000e-02 : f32
    %25 = vector.broadcast %cst_8 : f32 to vector<16x1xf32>
    %26 = arith.mulf %21, %25 : vector<16x1xf32>
    %cst_9 = arith.constant 3.125000e-02 : f32
    %27 = vector.broadcast %cst_9 : f32 to vector<16x1xf32>
    %28 = arith.mulf %24, %27 : vector<16x1xf32>
    %29 = arith.mulf %26, %26 : vector<16x1xf32>
    %30 = arith.subf %28, %29 : vector<16x1xf32>
    %cst_10 = arith.constant 0.000000e+00 : f32
    %31 = vector.broadcast %cst_10 : f32 to vector<16x1xf32>
    %32 = arith.maximumf %30, %31 : vector<16x1xf32>
    %33 = vector.broadcast %26 : vector<16x1xf32> to vector<16x128xf32>
    %34 = arith.subf %19, %33 : vector<16x128xf32>
    %cst_11 = arith.constant 9.99999996E-13 : f32
    %35 = vector.broadcast %cst_11 : f32 to vector<16x1xf32>
    %36 = arith.addf %32, %35 : vector<16x1xf32>
    %37 = math.rsqrt %36 : vector<16x1xf32>
    %38 = vector.broadcast %37 : vector<16x1xf32> to vector<16x128xf32>
    %39 = arith.mulf %34, %38 : vector<16x128xf32>
    %c0_12 = arith.constant 0 : index
    %c0_13 = arith.constant 0 : index
    %40 = vector.load %arg3[%c0_12, %c0_13] : memref<1x128xf32, #tpu.memory_space<vmem>>, vector<1x128xf32>
    %41 = vector.broadcast %40 : vector<1x128xf32> to vector<16x128xf32>
    %42 = arith.mulf %39, %41 : vector<16x128xf32>
    %c0_14 = arith.constant 0 : index
    %c0_15 = arith.constant 0 : index
    %43 = vector.load %arg4[%c0_14, %c0_15] : memref<1x128xf32, #tpu.memory_space<vmem>>, vector<1x128xf32>
    %44 = vector.broadcast %43 : vector<1x128xf32> to vector<16x128xf32>
    %45 = arith.addf %42, %44 : vector<16x128xf32>
    %c0_16 = arith.constant 0 : index
    %c0_17 = arith.constant 0 : index
    %46 = vector.load %arg5[%c0_16, %c0_17] : memref<16x128xf32, #tpu.memory_space<vmem>>, vector<16x128xf32>
    tpu.vector_store %arg5[%c0_16, %c0_17], %45 {strides = array<i32>} : memref<16x128xf32, #tpu.memory_space<vmem>>, vector<16x128xf32>,
    return
  }
  func.func @transform_0(%arg0: i32) -> (i32, i32) {
    %c0_i32 = arith.constant 0 : i32
    %c0_i32_0 = arith.constant 0 : i32
    return %arg0, %c0_i32 : i32, i32
  }
  func.func @transform_1(%arg0: i32) -> (i32, i32) {
    %c0_i32 = arith.constant 0 : i32
    %c0_i32_0 = arith.constant 0 : i32
    %c0_i32_1 = arith.constant 0 : i32
    return %c0_i32, %c0_i32_0 : i32, i32
  }
  func.func @transform_2(%arg0: i32) -> (i32, i32) {
    %c0_i32 = arith.constant 0 : i32
    %c0_i32_0 = arith.constant 0 : i32
    %c0_i32_1 = arith.constant 0 : i32
    return %c0_i32, %c0_i32_0 : i32, i32
  }
  func.func @transform_3(%arg0: i32) -> (i32, i32) {
    %c0_i32 = arith.constant 0 : i32
    %c0_i32_0 = arith.constant 0 : i32
    %c0_i32_1 = arith.constant 0 : i32
    return %c0_i32, %c0_i32_0 : i32, i32
  }
  func.func @transform_4(%arg0: i32) -> (i32, i32) {
    %c0_i32 = arith.constant 0 : i32
    %c0_i32_0 = arith.constant 0 : i32
    return %arg0, %c0_i32 : i32, i32
  }
}

</mosaic_0001>

<bundles_post_ra>
// kernel: tpu_custom_call.1
= control target key start
LH: loop header
LB: loop body
LE: loop exit
PB: predicated region body
PF: predicated region fallthrough
CT: control target
= control target key end

     0   :  { %9 = vsyncpa [#allocation3], 0  ;;  %s470_s0 = inlined_call_operand.vmem [shape: s32[16,4], index: 0, kind: input, shape index: {}]   ;;  %s471_s1 = inlined_call_operand.hbm [shape: f32[128,128], index: 1, kind: input, shape index: {}]   ;;  %s472_s2 = inlined_call_operand.vmem [shape: f32[1,128], index: 2, kind: input, shape index: {}]   ;;  %s473_s3 = inlined_call_operand.vmem [shape: f32[1,128], index: 3, kind: input, shape index: {}]   ;;  %s474_s4 = inlined_call_operand.hbm [shape: f32[16,128], index: 4, kind: output, shape index: {}]  }
   0x1   :  { %10 = vsyncpa [#allocation4], 0  ;;  %s394_s15 = smov [#allocation2]   ;;  %s346_s19 = scalar_lea.hbm %s471_s1, 2048 }
   0x2   :  { %s18_s16 = sshll.u32 %s394_s15, 4  ;;  %p347_p0 = scmp.ne.s32.totalorder %s471_s1, %s346_s19  ;;  %s19_s16 = int_to_ptr.vmem [resolvable:$true] %s18_s16 }
   0x3   :  { %p350_p1 = scmp.lt.u32.totalorder %s346_s19, %s471_s1 }
   0x5   :  { %p352_p2 = pnand %p350_p1, %p347_p0 }
   0x7   :  { %355 = shalt.err (!%p352_p2)
}
   0x8   :  { %s356_s24 = scalar_lea.vmem %s19_s16, 2048  ;;  %p361_p4 = scmp.lt.s32.totalorder %s19_s16, %s19_s16 }
   0x9   :  { %p357_p3 = scmp.ne.s32.totalorder %s19_s16, %s356_s24  ;;  %p362_p5 = scmp.lt.s32.totalorder %s356_s24, %s356_s24 }
   0xb   :  { %p363_p6 = por %p362_p5, %p361_p4 }
   0xd   :  { %p364_p7 = pnand %p363_p6, %p357_p3 }
   0xf   :  { %367 = shalt.err (!%p364_p7)
}
  0x10   :  { %s395_s25 = smov 128   ;;  %s396_s26 = smov 8  }
  0x11   :  { %24 = dma.hbm_to_vmem [thread:$0]  %s471_s1, 2048, %s19_s16, [#allocation3], %s395_s25, %s395_s25, %s396_s26  }
  0x12   :  { %390 = dma.done.wait [#allocation3], 2048  }
  0x13   :  { %391 = vsyncadd [#allocation3], 4294965248  ;;  %v397_v0 = vmov 0   ;;  %v35_v1 = vld [vmem:[%s470_s0 + $0x8] sm:$0xff]  ;;  %v34_v2 = vld [vmem:[%s470_s0] sm:$0xff]  ;;  %v398_v9 = vmov 1   ;;  %v32_v32 = vlaneseq }
  0x14   :  { %336 = vset.pattern.permute.xlu1 %v397_v0  ;;  %334 = vset.pattern.permute.xlu0 %v397_v0  ;;  %v78_v3 = vld [vmem:[#allocation2] sm:$0xff]  ;;  %v79_v4 = vld [vmem:[#allocation2 + $0x8] sm:$0xff]  ;;  %v80_v5 = vld [vmem:[#allocation2 + $0x10] sm:$0xff]  ;;  %v399_v13 = vmov 2   ;;  %v400_v19 = vmov 3   ;;  %v401_v39 = vmov 1.0  }
  0x15   :  { %40 = vperm.xlu1 %336, %v35_v1   ;;  %37 = vperm.xlu0 %334, %v34_v2   ;;  %v81_v6 = vld [vmem:[#allocation2 + $0x18] sm:$0xff]  ;;  %v293_v7 = vpack.c.bf16 %v79_v4, %v78_v3  ;;  %v82_v10 = vld [vmem:[#allocation2 + $0x20] sm:$0xff]  ;;  %v83_v11 = vld [vmem:[#allocation2 + $0x28] sm:$0xff]  ;;  %v33_v34 = vand.u32 127, %v32_v32  ;;  %s402_s9 = smov [#allocation5]  }
  0x16   :  { %v297_v8 = vpack.c.bf16 %v81_v6, %v80_v5  ;;  %v301_v12 = vpack.c.bf16 %v83_v11, %v82_v10  ;;  %v84_v14 = vld [vmem:[#allocation2 + $0x30] sm:$0xff]  ;;  %v85_v15 = vld [vmem:[#allocation2 + $0x38] sm:$0xff]  ;;  %v86_v17 = vld [vmem:[#allocation2 + $0x40] sm:$0xff]  ;;  %s222_s10 = sshll.u32 %s402_s9, 4  ;;  %s223_s10 = int_to_ptr.vmem [resolvable:$true] %s222_s10 }
  0x17   :  { %294 = vmatprep.subr.bf16.mxu0 %v293_v7  ;;  %v305_v16 = vpack.c.bf16 %v85_v15, %v84_v14  ;;  %v87_v18 = vld [vmem:[#allocation2 + $0x48] sm:$0xff]  ;;  %v88_v21 = vld [vmem:[#allocation2 + $0x50] sm:$0xff]  ;;  %v89_v22 = vld [vmem:[#allocation2 + $0x58] sm:$0xff]  ;;  %s368_s11 = scalar_lea.vmem %s223_s10, 256  ;;  %p373_p9 = scmp.lt.s32.totalorder %s223_s10, %s223_s10 }
  0x18   :  { %296 = vmatpush3.bf16.msra.mxu0 %v293_v7  ;;  %v309_v20 = vpack.c.bf16 %v87_v18, %v86_v17  ;;  %v313_v23 = vpack.c.bf16 %v89_v22, %v88_v21  ;;  %v90_v24 = vld [vmem:[#allocation2 + $0x60] sm:$0xff]  ;;  %v91_v25 = vld [vmem:[#allocation2 + $0x68] sm:$0xff]  ;;  %v92_v27 = vld [vmem:[#allocation2 + $0x70] sm:$0xff]  ;;  %p369_p8 = scmp.ne.s32.totalorder %s223_s10, %s368_s11  ;;  %p374_p10 = scmp.lt.s32.totalorder %s368_s11, %s368_s11 }
  0x19   :  { %337 = vset.pattern.permute.xlu1 %v398_v9  ;;  %335 = vset.pattern.permute.xlu0 %v398_v9  ;;  %v317_v26 = vpack.c.bf16 %v91_v25, %v90_v24  ;;  %v93_v28 = vld [vmem:[#allocation2 + $0x78] sm:$0xff]  ;;  %v238_v63 = vld [vmem:[%s472_s2] ss:$0 sm:$0xff] }
  0x1a   :  { %48 = vperm.xlu1 %337, %v35_v1   ;;  %45 = vperm.xlu0 %335, %v34_v2   ;;  %v321_v29 = vpack.c.bf16 %v93_v28, %v92_v27  ;;  %p375_p11 = por %p374_p10, %p373_p9 }
  0x1b   :  { %298 = vmatprep.subr.bf16.mxu0 %v297_v8 }
  0x1c   :  { %300 = vmatpush3.bf16.msra.mxu0 %v297_v8  ;;  %p376_p12 = pnand %p375_p11, %p369_p8 }
  0x1d   :  { %302 = vmatprep.subr.bf16.mxu0 %v301_v12 }
  0x1e   :  { %338 = vset.pattern.permute.xlu1 %v399_v13  ;;  %339 = vset.pattern.permute.xlu0 %v399_v13 }
  0x1f   :  { %55 = vperm.xlu1 %338, %v34_v2   ;;  %58 = vperm.xlu0 %339, %v35_v1  }
  0x20   :  { %304 = vmatpush3.bf16.msra.mxu0 %v301_v12 }
  0x21   :  { %306 = vmatprep.subr.bf16.mxu0 %v305_v16 }
  0x23   :  { %340 = vset.pattern.permute.xlu1 %v400_v19  ;;  %341 = vset.pattern.permute.xlu0 %v400_v19 }
  0x24   :  { %65 = vperm.xlu1 %340, %v34_v2   ;;  %308 = vmatpush3.bf16.msra.mxu0 %v305_v16 }
  0x25   :  { %310 = vmatprep.subr.bf16.mxu0 %v309_v20 }
  0x28   :  { %68 = vperm.xlu1 %340, %v35_v1   ;;  %312 = vmatpush3.bf16.msra.mxu0 %v309_v20  ;;  %v239_v1 = vld [vmem:[%s473_s3] ss:$0 sm:$0xff] }
  0x29   :  { %314 = vmatprep.subr.bf16.mxu0 %v313_v23 }
  0x2c   :  { %316 = vmatpush3.bf16.msra.mxu0 %v313_v23 }
  0x2d   :  { %318 = vmatprep.subr.bf16.mxu0 %v317_v26 }
  0x30   :  { %320 = vmatpush3.bf16.msra.mxu0 %v317_v26 }
  0x31   :  { %322 = vmatprep.subr.bf16.mxu0 %v321_v29 }
  0x34   :  { %324 = vmatpush3.bf16.msra.mxu0 %v321_v29 }
  0x94   :  { %v41_v30 = vpop.permute.xlu1 %40  ;;  %v38_v31 = vpop.permute.xlu0 %37 }
  0x95   :  { %vm42_vm0 = vcmp.eq.s32.totalorder %v38_v31, %v33_v34  ;;  %vm43_vm9 = vcmp.eq.s32.totalorder %v41_v30, %v33_v34 }
  0x99   :  { %v49_v33 = vpop.permute.xlu1 %48  ;;  %v46_v35 = vpop.permute.xlu0 %45 }
  0x9a   :  { %vm50_vm1 = vcmp.eq.s32.totalorder %v46_v35, %v33_v34  ;;  %vm51_vm4 = vcmp.eq.s32.totalorder %v49_v33, %v33_v34 }
  0x9b   :  { %vm52_vm2 = vmor %vm42_vm0, %vm50_vm1 }
  0x9c   :  { %vm53_vm10 = vmor %vm43_vm9, %vm51_vm4 }
  0x9e   :  { %v56_v36 = vpop.permute.xlu1 %55  ;;  %v59_v37 = vpop.permute.xlu0 %58 }
  0x9f   :  { %vm60_vm3 = vcmp.eq.s32.totalorder %v56_v36, %v33_v34  ;;  %vm61_vm7 = vcmp.eq.s32.totalorder %v59_v37, %v33_v34 }
  0xa0   :  { %vm62_vm6 = vmor %vm52_vm2, %vm60_vm3 }
  0xa1   :  { %vm63_vm11 = vmor %vm53_vm10, %vm61_vm7 }
  0xa3   :  { %v66_v38 = vpop.permute.xlu1 %65 }
  0xa4   :  { %vm70_vm5 = vcmp.eq.s32.totalorder %v66_v38, %v33_v34 }
  0xa5   :  { %vm72_vm8 = vmor %vm62_vm6, %vm70_vm5 }
  0xa6   :  { %290 = vmatprep.mubr.msk.f32.mxu0 %vm72_vm8, %v401_v39 }
  0xa7   :  { %v69_v40 = vpop.permute.xlu1 %68 }
  0xa8   :  { %vm71_vm12 = vcmp.eq.s32.totalorder %v69_v40, %v33_v34 }
  0xa9   :  { %vm73_vm13 = vmor %vm63_vm11, %vm71_vm12 }
  0xaa   :  { %291 = vmatmul.mubr.msk.f32.vlgmr.msra.gmra.mrb[0].mxu0 %vm73_vm13, %v401_v39 }
 0x17d   :  { %v292_v41 = vpop.f32.mrb[0].mxu0 }
 0x17e   :  { %171 = vadd.xlane.f32.xlu1 %v292_v41  ;;  %v160_v42 = vpop.f32.mrb[1].mxu0  ;;  %v174_v44 = vmul.f32 %v292_v41, %v292_v41 }
 0x17f   :  { %169 = vadd.xlane.f32.xlu0 %v160_v42  ;;  %v173_v43 = vmul.f32 %v160_v42, %v160_v42 }
 0x183   :  { %175 = vadd.xlane.f32.xlu0 %v173_v43 }
 0x187   :  { %177 = vadd.xlane.f32.xlu0 %v174_v44 }
 0x20b   :  { %v172_v47 = vpop.xlane.xlu1 %171 }
 0x20c   :  { %v170_v45 = vpop.xlane.xlu0 %169  ;;  %v180_v49 = vmul.f32 0.03125, %v172_v47 }
 0x20d   :  { %v179_v46 = vmul.f32 0.03125, %v170_v45 }
 0x20e   :  { %v184_v54 = vmul.f32 %v180_v49, %v180_v49  ;;  %v190_v2 = vsub.f32 %v292_v41, %v180_v49 }
 0x20f   :  { %v183_v50 = vmul.f32 %v179_v46, %v179_v46  ;;  %v189_v61 = vsub.f32 %v160_v42, %v179_v46 }
 0x210   :  { %v176_v48 = vpop.xlane.xlu0 %175 }
 0x211   :  { %v181_v51 = vmul.f32 0.03125, %v176_v48 }
 0x213   :  { %v185_v52 = vsub.f32 %v181_v51, %v183_v50 }
 0x214   :  { %v178_v53 = vpop.xlane.xlu0 %177 }
 0x215   :  { %v187_v55 = vmax.f32 %v185_v52, 0.0  ;;  %v182_v56 = vmul.f32 0.03125, %v178_v53 }
 0x217   :  { %v191_v57 = vadd.f32 1e-12, %v187_v55  ;;  %v186_v58 = vsub.f32 %v182_v56, %v184_v54 }
 0x219   :  { %342 = vrsqrt.f32 %v191_v57  ;;  %v188_v59 = vmax.f32 %v186_v58, 0.0 }
 0x21b   :  { %v192_v60 = vadd.f32 1e-12, %v188_v59 }
 0x21d   :  { %344 = vrsqrt.f32 %v192_v60 }
 0x223   :  { %v343_v62 = vpop.eup %342 }
 0x224   :  { %v195_v0 = vmul.f32 %v343_v62, %v189_v61 }
 0x226   :  { %v204_v3 = vmul.f32 %v238_v63, %v195_v0 }
 0x227   :  { %v345_v4 = vpop.eup %344 }
 0x228   :  { %v196_v5 = vmul.f32 %v345_v4, %v190_v2  ;;  %v213_v6 = vadd.f32 %v239_v1, %v204_v3 }
 0x22a   :  { %v205_v7 = vmul.f32 %v238_v63, %v196_v5  ;;  %215 = vst [vmem:[#allocation5] sm:$0xff] %v213_v6 }
 0x22c   :  { %v214_v8 = vadd.f32 %v239_v1, %v205_v7 }
 0x22e   :  { %216 = vst [vmem:[#allocation5 + $0x8] sm:$0xff] %v214_v8 }
 0x22f   :  { %379 = shalt.err (!%p376_p12)
}
 0x230   :  { %s380_s12 = scalar_lea.hbm %s474_s4, 256 }
 0x231   :  { %p381_p13 = scmp.ne.s32.totalorder %s474_s4, %s380_s12  ;;  %p384_p0 = scmp.lt.u32.totalorder %s380_s12, %s474_s4 }
 0x233   :  { %p386_p1 = pnand %p384_p0, %p381_p13 }
 0x235   :  { %389 = shalt.err (!%p386_p1)
}
 0x236   :  { %228 = dma.vmem_to_hbm [thread:$0]  %s223_s10, 256, %s474_s4, [#allocation4], %s395_s25, %s395_s25, %s396_s26  }
 0x237   :  { %392 = dma.done.wait [#allocation4], 256  }
 0x238   :  { %393 = vsyncadd [#allocation4], 4294967040 }
 0x239   :  { %232 = vsyncpa [#allocation3], 1 }
 0x23a   :  { %233 = vsyncpa [#allocation4], 1 }

</bundles_post_ra>
